<compile_context>
chip_gen: v7x
topology: tpu7x:2x2x1
jax: 0.10.0
libtpu: 0.0.40
codegen_flags: <defaults>
</compile_context>

<pallas_src>
import jax
import jax.numpy as jnp
from jax import lax
from jax.experimental import pallas as pl
from jax.experimental.pallas import tpu as pltpu


ATOM_FEA_LEN = 90      # K (input features)
H_FEA_LEN = 180        # H (hidden features)
N_OUT = 2              # output classes
H_PAD = 256            # lane-dense padded hidden width (padded once, offline)


def _round_up(x, m):
    return (x + m - 1) // m * m


def _softplus(x):
    # Matches torch.nn.Softplus (beta=1, threshold=20): linear for x > 20.
    # NOTE: the threshold-20 linearization is also used inside the 2-class
    # log-softmax closed form below; deviation vs exact log_softmax is ~2e-9
    # when |logit diff| > 20 — negligible.
    return jnp.where(x > 20.0, x, jnp.log1p(jnp.exp(jnp.minimum(x, 20.0))))


def _net_kernel(x_ref, w1_ref, b1_ref, wd_ref, bd_ref, out_ref):
    # Linear(90 -> 180, hidden padded to 256) + Softplus (MXU + EUP).
    # K=90 is an unaligned contraction; Mosaic masks/zero-pads it internally.
    h = jnp.dot(x_ref[...], w1_ref[...], preferred_element_type=jnp.float32)
    h = _softplus(h + b1_ref[...])

    # Dropout: identity in eval/inference mode.
    # TODO(synk): training-mode dropout (p=0.5) would need pltpu.prng_* bits.

    # fc_out + LogSoftmax, 2-class closed form, batch-on-lanes:
    # rows 0 and 1 of wd_ref both hold (w2[:,1] - w2[:,0]) (padded hidden columns
    # exactly zero), so dt rows 0,1 = logits[:,1] - logits[:,0] for every batch
    # lane.  Contraction is on the last dim of both operands (q@k^T pattern).
    dt = lax.dot_general(wd_ref[...], h, (((1,), (1,)), ((), ())),
                         preferred_element_type=jnp.float32)        # (8, tm)
    d = dt + bd_ref[...]                                            # scalar bias diff

    # LogSoftmax(dim=1):  out0 = -softplus(d),  out1 = -softplus(-d) = d - softplus(d)
    sp = _softplus(d)
    row = lax.broadcasted_iota(jnp.int32, d.shape, 0)
    out_ref[...] = jnp.where(row == 0, -sp, jnp.where(row == 1, d - sp, 0.0))


def prepare_params(w1, b1, w2, b2, *, matmul_dtype=jnp.float32):
    """One-time weight prep (do this at load time, not per call).

    w1: [90, 180], b1: [1, 180], w2: [180, 2], b2: [1, 2]  (weights stored as
    [in_features, out_features], i.e. already transposed vs torch).

    matmul_dtype=jnp.bfloat16 routes the first matmul through the bf16 MXU path
    (faster, halves the x DMA) but will not meet 3e-5 parity with f32; default f32.
    """
    w1p = jnp.zeros((ATOM_FEA_LEN, H_PAD), jnp.float32).at[:, :H_FEA_LEN].set(w1)
    b1p = jnp.zeros((1, H_PAD), jnp.float32).at[:, :H_FEA_LEN].set(b1)

    # 2-class difference weights, replicated in sublanes 0 and 1 for the
    # batch-on-lanes epilogue.  IMPORTANT: columns H_FEA_LEN..H_PAD-1 MUST stay
    # exactly zero — the padded hidden columns evaluate softplus(0)=ln(2) (not 0),
    # and only these zero weight columns keep them out of the logit difference.
    wd = (w2[:, 1] - w2[:, 0]).astype(jnp.float32)                   # [180]
    wd8 = jnp.zeros((8, H_PAD), jnp.float32)
    wd8 = wd8.at[0, :H_FEA_LEN].set(wd).at[1, :H_FEA_LEN].set(wd)
    bd = jnp.reshape(b2[0, 1] - b2[0, 0], (1, 1)).astype(jnp.float32)
    return w1p.astype(matmul_dtype), b1p, wd8, bd


def net_forward(struc_fea, params, *, tile_m=1024, core_parallel=False):
    """struc_fea: [B, 90] f32 (no padding required). Returns [B, 2] log-probs.

    tile_m: rows per grid step. 512-1024 amortizes the ~0.35 us/step pipeline
      overhead; at 1024 the double-buffered VMEM footprint is ~1.2 MiB.
      When B <= tile_m a single exact-size block is used (no wasted compute).
    core_parallel: set True on v7x to shard the batch grid across both
      TensorCores (leave False on single-core v5e/v6e).
    """
    w1p, b1p, wd8, bd = params
    B, K = struc_fea.shape
    assert K == w1p.shape[0]
    assert tile_m % 128 == 0 and tile_m >= 128

    # Single exact block for small batches; otherwise lane-dense 1024-row tiles
    # with a ragged (masked) final block handled by Pallas.
    tm = B if B <= tile_m else tile_m
    grid_m = pl.cdiv(B, tm)

    x = struc_fea if struc_fea.dtype == w1p.dtype else struc_fea.astype(w1p.dtype)

    h_pad = w1p.shape[1]
    rows = grid_m * tm
    flops = 2 * rows * (K * h_pad + h_pad * 8)
    transcendentals = rows * (h_pad + 8)
    bytes_accessed = (B * K * x.dtype.itemsize
                      + 4 * (w1p.size + b1p.size + wd8.size + bd.size + 8 * B))

    dim_sem = (pltpu.CORE_PARALLEL,) if core_parallel else ("parallel",)

    out = pl.pallas_call(
        _net_kernel,
        out_shape=jax.ShapeDtypeStruct((8, B), jnp.float32),
        grid_spec=pl.GridSpec(
            grid=(grid_m,),
            in_specs=[
                pl.BlockSpec((tm, K), lambda i: (i, 0)),       # x: tiled over batch
                pl.BlockSpec((K, h_pad), lambda i: (0, 0)),    # W1: VMEM-resident
                pl.BlockSpec((1, h_pad), lambda i: (0, 0)),    # b1: VMEM-resident
                pl.BlockSpec((8, h_pad), lambda i: (0, 0)),    # diff weights (rows 0,1)
                pl.BlockSpec((1, 1), lambda i: (0, 0)),        # diff bias scalar
            ],
            out_specs=pl.BlockSpec((8, tm), lambda i: (0, i)),  # batch-on-lanes output
        ),
        compiler_params=pltpu.CompilerParams(
            dimension_semantics=dim_sem,
        ),
        cost_estimate=pl.CostEstimate(
            flops=flops,
            transcendentals=transcendentals,
            bytes_accessed=bytes_accessed,
        ),
    )(x, w1p, b1p, wd8, bd)

    # Rows 0/1 hold log p(class0)/log p(class1) for every batch lane.
    return out[:N_OUT, :].T


def init_params(key):
    """Deterministic init mimicking torch.nn.Linear (uniform ±1/sqrt(fan_in)).
    Weights are stored as [in_features, out_features] (already transposed)."""
    k1, k2, k3, k4 = jax.random.split(key, 4)
    bound1 = 1.0 / jnp.sqrt(ATOM_FEA_LEN)
    bound2 = 1.0 / jnp.sqrt(H_FEA_LEN)
    w1 = jax.random.uniform(k1, (ATOM_FEA_LEN, H_FEA_LEN), jnp.float32, -bound1, bound1)
    b1 = jax.random.uniform(k2, (1, H_FEA_LEN), jnp.float32, -bound1, bound1)
    w2 = jax.random.uniform(k3, (H_FEA_LEN, N_OUT), jnp.float32, -bound2, bound2)
    b2 = jax.random.uniform(k4, (1, N_OUT), jnp.float32, -bound2, bound2)
    return w1, b1, w2, b2


def _reference(struc_fea, w1, b1, w2, b2):
    h = _softplus(struc_fea @ w1 + b1)
    logits = h @ w2 + b2
    return jax.nn.log_softmax(logits, axis=1)


if __name__ == "__main__":
    key = jax.random.PRNGKey(0)
    k_params, k_x1, k_x2 = jax.random.split(key, 3)
    w1, b1, w2, b2 = init_params(k_params)
    params = prepare_params(w1, b1, w2, b2)

    # Small batch (single exact block).
    B = 8
    x = jax.random.normal(k_x1, (B, ATOM_FEA_LEN), dtype=jnp.float32)
    out = jax.block_until_ready(net_forward(x, params))
    ref = _reference(x, w1, b1, w2, b2)
    assert out.shape == (B, N_OUT)
    assert jnp.allclose(out, ref, atol=3e-5, rtol=3e-5), "mismatch vs reference (B=8)"

    # Larger, non-multiple batch (still a single exact-size block at tile_m=1024).
    B2 = 300
    x2 = jax.random.normal(k_x2, (B2, ATOM_FEA_LEN), dtype=jnp.float32)
    out2 = jax.block_until_ready(net_forward(x2, params))
    ref2 = _reference(x2, w1, b1, w2, b2)
    assert out2.shape == (B2, N_OUT)
    assert jnp.allclose(out2, ref2, atol=3e-5, rtol=3e-5), "mismatch vs reference (B=300)"

    # Exercise the multi-step batch grid (ragged final block) with a small tile_m.
    out3 = jax.block_until_ready(net_forward(x2, params, tile_m=128))
    assert out3.shape == (B2, N_OUT)
    assert jnp.allclose(out3, ref2, atol=3e-5, rtol=3e-5), "mismatch vs reference (grid)"

    print("KERNEL_OK")
</pallas_src>

<mosaic_0001>
module attributes {stable_mosaic.version = 11 : i64} {
  func.func @_net_kernel(%arg0: i32, %arg1: memref<8x90xf32, #tpu.memory_space<vmem>>, %arg2: memref<90x256xf32, #tpu.memory_space<vmem>>, %arg3: memref<1x256xf32, #tpu.memory_space<vmem>>, %arg4: memref<8x256xf32, #tpu.memory_space<vmem>>, %arg5: memref<1x1xf32, #tpu.memory_space<vmem>>, %arg6: memref<8x8xf32, #tpu.memory_space<vmem>>) attributes {dimension_semantics = [#tpu.dimension_semantics<parallel>], iteration_bounds = array<i64: 1>, scalar_prefetch = 0 : i64, scratch_operands = 0 : i64, tpu.core_type = #tpu.core_type<tc>, window_params = [{transform_indices = @transform_0, window_bounds = array<i64: 8, 90>}, {pipeline_mode = #tpu.pipeline_mode<synchronous>, transform_indices = @transform_1, window_bounds = array<i64: 90, 256>}, {pipeline_mode = #tpu.pipeline_mode<synchronous>, transform_indices = @transform_2, window_bounds = array<i64: 1, 256>}, {pipeline_mode = #tpu.pipeline_mode<synchronous>, transform_indices = @transform_3, window_bounds = array<i64: 8, 256>}, {pipeline_mode = #tpu.pipeline_mode<synchronous>, transform_indices = @transform_4, window_bounds = array<i64: 1, 1>}, {transform_indices = @transform_5, window_bounds = array<i64: 8, 8>}]} {
    %c0 = arith.constant 0 : index
    %c0_0 = arith.constant 0 : index
    %0 = vector.load %arg1[%c0, %c0_0] : memref<8x90xf32, #tpu.memory_space<vmem>>, vector<8x90xf32>
    %c0_1 = arith.constant 0 : index
    %c0_2 = arith.constant 0 : index
    %1 = vector.load %arg2[%c0_1, %c0_2] : memref<90x256xf32, #tpu.memory_space<vmem>>, vector<90x256xf32>
    %cst = arith.constant dense<0.000000e+00> : vector<8x256xf32>
    %2 = tpu.matmul %0, %1, %cst {dimension_numbers = #tpu.dot_dimension_numbers<[1], [0], [0], [1], [0, 0, 1, 1], [], []>} : vector<8x90xf32>, vector<90x256xf32>, vector<8x256xf32> -> vector<8x256xf32>
    %c0_3 = arith.constant 0 : index
    %c0_4 = arith.constant 0 : index
    %3 = vector.load %arg3[%c0_3, %c0_4] : memref<1x256xf32, #tpu.memory_space<vmem>>, vector<1x256xf32>
    %4 = vector.broadcast %3 : vector<1x256xf32> to vector<8x256xf32>
    %5 = arith.addf %2, %4 : vector<8x256xf32>
    %cst_5 = arith.constant 2.000000e+01 : f32
    %6 = vector.broadcast %cst_5 : f32 to vector<8x256xf32>
    %7 = arith.cmpf ogt, %5, %6 : vector<8x256xf32>
    %cst_6 = arith.constant 2.000000e+01 : f32
    %8 = vector.broadcast %cst_6 : f32 to vector<8x256xf32>
    %9 = arith.minimumf %5, %8 : vector<8x256xf32>
    %10 = math.exp %9 : vector<8x256xf32>
    %11 = math.log1p %10 : vector<8x256xf32>
    %12 = arith.select %7, %5, %11 : vector<8x256xi1>, vector<8x256xf32>
    %c0_7 = arith.constant 0 : index
    %c0_8 = arith.constant 0 : index
    %13 = vector.load %arg4[%c0_7, %c0_8] : memref<8x256xf32, #tpu.memory_space<vmem>>, vector<8x256xf32>
    %cst_9 = arith.constant dense<0.000000e+00> : vector<8x8xf32>
    %14 = tpu.matmul %13, %12, %cst_9 {dimension_numbers = #tpu.dot_dimension_numbers<[1], [1], [0], [0], [0, 0, 1, 0], [], []>} : vector<8x256xf32>, vector<8x256xf32>, vector<8x8xf32> -> vector<8x8xf32>
    %c0_10 = arith.constant 0 : index
    %c0_11 = arith.constant 0 : index
    %15 = vector.load %arg5[%c0_10, %c0_11] : memref<1x1xf32, #tpu.memory_space<vmem>>, vector<1x1xf32>
    %16 = vector.broadcast %15 : vector<1x1xf32> to vector<8x8xf32>
    %17 = arith.addf %14, %16 : vector<8x8xf32>
    %cst_12 = arith.constant 2.000000e+01 : f32
    %18 = vector.broadcast %cst_12 : f32 to vector<8x8xf32>
    %19 = arith.cmpf ogt, %17, %18 : vector<8x8xf32>
    %cst_13 = arith.constant 2.000000e+01 : f32
    %20 = vector.broadcast %cst_13 : f32 to vector<8x8xf32>
    %21 = arith.minimumf %17, %20 : vector<8x8xf32>
    %22 = math.exp %21 : vector<8x8xf32>
    %23 = math.log1p %22 : vector<8x8xf32>
    %24 = arith.select %19, %17, %23 : vector<8x8xi1>, vector<8x8xf32>
    %25 = tpu.iota {dimensions = array<i32: 0>} : vector<8x8xi32>
    %c0_i32 = arith.constant 0 : i32
    %26 = vector.broadcast %c0_i32 : i32 to vector<8x8xi32>
    %27 = arith.cmpi eq, %25, %26 : vector<8x8xi32>
    %cst_14 = arith.constant 0.000000e+00 : f32
    %28 = vector.broadcast %cst_14 : f32 to vector<8x8xf32>
    %29 = arith.subf %28, %24 : vector<8x8xf32>
    %c1_i32 = arith.constant 1 : i32
    %30 = vector.broadcast %c1_i32 : i32 to vector<8x8xi32>
    %31 = arith.cmpi eq, %25, %30 : vector<8x8xi32>
    %32 = arith.subf %17, %24 : vector<8x8xf32>
    %cst_15 = arith.constant 0.000000e+00 : f32
    %33 = vector.broadcast %cst_15 : f32 to vector<8x8xf32>
    %34 = arith.select %31, %32, %33 : vector<8x8xi1>, vector<8x8xf32>
    %35 = arith.select %27, %29, %34 : vector<8x8xi1>, vector<8x8xf32>
    %c0_16 = arith.constant 0 : index
    %c0_17 = arith.constant 0 : index
    %36 = vector.load %arg6[%c0_16, %c0_17] : memref<8x8xf32, #tpu.memory_space<vmem>>, vector<8x8xf32>
    tpu.vector_store %arg6[%c0_16, %c0_17], %35 {strides = array<i32>} : memref<8x8xf32, #tpu.memory_space<vmem>>, vector<8x8xf32>,
    return
  }
  func.func @transform_0(%arg0: i32) -> (i32, i32) {
    %c0_i32 = arith.constant 0 : i32
    %c0_i32_0 = arith.constant 0 : i32
    return %arg0, %c0_i32 : i32, i32
  }
  func.func @transform_1(%arg0: i32) -> (i32, i32) {
    %c0_i32 = arith.constant 0 : i32
    %c0_i32_0 = arith.constant 0 : i32
    %c0_i32_1 = arith.constant 0 : i32
    return %c0_i32, %c0_i32_0 : i32, i32
  }
  func.func @transform_2(%arg0: i32) -> (i32, i32) {
    %c0_i32 = arith.constant 0 : i32
    %c0_i32_0 = arith.constant 0 : i32
    %c0_i32_1 = arith.constant 0 : i32
    return %c0_i32, %c0_i32_0 : i32, i32
  }
  func.func @transform_3(%arg0: i32) -> (i32, i32) {
    %c0_i32 = arith.constant 0 : i32
    %c0_i32_0 = arith.constant 0 : i32
    %c0_i32_1 = arith.constant 0 : i32
    return %c0_i32, %c0_i32_0 : i32, i32
  }
  func.func @transform_4(%arg0: i32) -> (i32, i32) {
    %c0_i32 = arith.constant 0 : i32
    %c0_i32_0 = arith.constant 0 : i32
    %c0_i32_1 = arith.constant 0 : i32
    return %c0_i32, %c0_i32_0 : i32, i32
  }
  func.func @transform_5(%arg0: i32) -> (i32, i32) {
    %c0_i32 = arith.constant 0 : i32
    %c0_i32_0 = arith.constant 0 : i32
    return %c0_i32, %arg0 : i32, i32
  }
}

</mosaic_0001>

<bundles_post_ra>
// kernel: tpu_custom_call.1
= control target key start
LH: loop header
LB: loop body
LE: loop exit
PB: predicated region body
PF: predicated region fallthrough
CT: control target
= control target key end

     0   :  { %s574_s0 = inlined_call_operand.hbm [shape: f32[8,90], index: 0, kind: input, shape index: {}]   ;;  %s575_s1 = inlined_call_operand.hbm [shape: f32[90,256], index: 1, kind: input, shape index: {}]   ;;  %s576_s2 = inlined_call_operand.vmem [shape: f32[1,256], index: 2, kind: input, shape index: {}]   ;;  %s577_s3 = inlined_call_operand.hbm [shape: f32[8,256], index: 3, kind: input, shape index: {}]   ;;  %s578_s4 = inlined_call_operand.<no memory space> [shape: f32[1,1], index: 4, kind: input, shape index: {}]   ;;  %s579_s5 = inlined_call_operand.hbm [shape: f32[8,8], index: 5, kind: output, shape index: {}]  }
   0x1   :  { %v10_v0 = vstv %s578_s4 }
   0x2   :  { %11 = vst [vmem:[#allocation2] sm:$0x1] %v10_v0 }
   0x3   :  { %12 = vsyncpa [#allocation4], 0 }
   0x4   :  { %13 = vsyncpa [#allocation7], 0 }
   0x5   :  { %14 = vsyncpa [#allocation5], 0  ;;  %s475_s20 = smov [#allocation6]   ;;  %s381_s24 = scalar_lea.hbm %s575_s1, 3072 }
   0x6   :  { %s30_s21 = sshll.u32 %s475_s20, 4  ;;  %p382_p0 = scmp.ne.s32.totalorder %s575_s1, %s381_s24  ;;  %s31_s21 = int_to_ptr.vmem [resolvable:$true] %s30_s21 }
   0x7   :  { %p385_p1 = scmp.lt.u32.totalorder %s381_s24, %s575_s1 }
   0x9   :  { %p387_p2 = pnand %p385_p1, %p382_p0 }
   0xb   :  { %390 = shalt.err (!%p387_p2)
}
   0xc   :  { %s391_s4 = scalar_lea.vmem %s31_s21, 3072  ;;  %p396_p4 = scmp.lt.s32.totalorder %s31_s21, %s31_s21 }
   0xd   :  { %p392_p3 = scmp.ne.s32.totalorder %s31_s21, %s391_s4  ;;  %p397_p5 = scmp.lt.s32.totalorder %s391_s4, %s391_s4 }
   0xf   :  { %p398_p6 = por %p397_p5, %p396_p4 }
  0x11   :  { %p399_p7 = pnand %p398_p6, %p392_p3 }
  0x13   :  { %402 = shalt.err (!%p399_p7)
}
  0x14   :  { %s476_s29 = smov 256   ;;  %s477_s30 = smov 16  }
  0x15   :  { %36 = dma.hbm_to_vmem [thread:$0]  %s575_s1, 3072, %s31_s21, [#allocation7], %s476_s29, %s476_s29, %s477_s30  }
  0x16   :  { %s478_s8 = smov [#allocation3]   ;;  %s479_s10 = smov [#allocation8]  }
  0x17   :  { %s21_s9 = sshll.u32 %s478_s8, 4  ;;  %s45_s11 = sshll.u32 %s479_s10, 4  ;;  %s22_s9 = int_to_ptr.vmem [resolvable:$true] %s21_s9  ;;  %s46_s11 = int_to_ptr.vmem [resolvable:$true] %s45_s11 }
  0x18   :  { %s403_s14 = scalar_lea.hbm %s574_s0, 128 }
  0x19   :  { %p404_p8 = scmp.ne.s32.totalorder %s574_s0, %s403_s14  ;;  %p407_p9 = scmp.lt.u32.totalorder %s403_s14, %s574_s0 }
  0x1b   :  { %p409_p10 = pnand %p407_p9, %p404_p8 }
  0x1d   :  { %412 = shalt.err (!%p409_p10)
}
  0x1e   :  { %s413_s1 = scalar_lea.vmem %s22_s9, 128  ;;  %p418_p12 = scmp.lt.s32.totalorder %s22_s9, %s22_s9 }
  0x1f   :  { %p414_p11 = scmp.ne.s32.totalorder %s22_s9, %s413_s1  ;;  %p419_p13 = scmp.lt.s32.totalorder %s413_s1, %s413_s1 }
  0x21   :  { %p420_p0 = por %p419_p13, %p418_p12 }
  0x23   :  { %p421_p1 = pnand %p420_p0, %p414_p11 }
  0x25   :  { %424 = shalt.err (!%p421_p1)
}
  0x26   :  { %24 = dma.hbm_to_vmem [thread:$0]  %s574_s0, 128, %s22_s9, [#allocation4]  }
  0x27   :  { %s425_s23 = scalar_lea.hbm %s577_s3, 256 }
  0x28   :  { %p426_p2 = scmp.ne.s32.totalorder %s577_s3, %s425_s23  ;;  %p429_p3 = scmp.lt.u32.totalorder %s425_s23, %s577_s3 }
  0x2a   :  { %p431_p4 = pnand %p429_p3, %p426_p2 }
  0x2c   :  { %434 = shalt.err (!%p431_p4)
}
  0x2d   :  { %s435_s28 = scalar_lea.vmem %s46_s11, 256  ;;  %p440_p6 = scmp.lt.s32.totalorder %s46_s11, %s46_s11 }
  0x2e   :  { %p436_p5 = scmp.ne.s32.totalorder %s46_s11, %s435_s28  ;;  %p441_p7 = scmp.lt.s32.totalorder %s435_s28, %s435_s28 }
  0x30   :  { %p442_p8 = por %p441_p7, %p440_p6 }
  0x32   :  { %p443_p9 = pnand %p442_p8, %p436_p5 }
  0x34   :  { %446 = shalt.err (!%p443_p9)
}
  0x35   :  { %48 = dma.hbm_to_vmem [thread:$0]  %s577_s3, 256, %s46_s11, [#allocation7]  }
  0x36   :  { %469 = dma.done.wait [#allocation4], 128  }
  0x37   :  { %470 = vsyncadd [#allocation4], 4294967168 }
  0x38   :  { %471 = dma.done.wait [#allocation7], 3328  }
  0x39   :  { %472 = vsyncadd [#allocation7], 4294963968  ;;  %v480_v1 = vmov 0.0   ;;  %v62_v2 = vld [vmem:[#allocation6 + $0x8] sm:$0xff]  ;;  %v64_v3 = vld [vmem:[#allocation6 + $0x18] sm:$0xff]  ;;  %vm101_vm0 = vcmask 1041408   ;;  %v87_v42 = vlaneseq }
  0x3a   :  { %172 = vmatprep.mubr.f32.mxu0 %v480_v1  ;;  %v61_v4 = vld [vmem:[#allocation6] sm:$0xff]  ;;  %v333_v5 = vpack.c.bf16 %v64_v3, %v62_v2  ;;  %v63_v6 = vld [vmem:[#allocation6 + $0x10] sm:$0xff]  ;;  %v66_v7 = vld [vmem:[#allocation6 + $0x28] sm:$0xff]  ;;  %vm481_vm1 = vmmov 1   ;;  %vm97_vm3 = vcmask 736256   ;;  %v482_v41 = vmov 0  }
  0x3b   :  { %v68_v8 = vld [vmem:[#allocation6 + $0x38] sm:$0xff]  ;;  %v335_v9 = vpack.c.bf16 %v63_v6, %v61_v4  ;;  %v65_v11 = vld [vmem:[#allocation6 + $0x20] sm:$0xff]  ;;  %v67_v12 = vld [vmem:[#allocation6 + $0x30] sm:$0xff]  ;;  %368 = vset.pattern.permute.xlu0 %v482_v41  ;;  %v553_v43 = vshrl.u32 %v87_v42, 7  ;;  %vm311_vm12 = vcmask 64512  }
  0x3c   :  { %v337_v10 = vpack.c.bf16 %v68_v8, %v66_v7  ;;  %v70_v13 = vld [vmem:[#allocation6 + $0x48] sm:$0xff]  ;;  %334 = vmatprep.subr.bf16.mxu0 %v333_v5  ;;  %v72_v14 = vld [vmem:[#allocation6 + $0x58] sm:$0xff]  ;;  %v339_v15 = vpack.c.bf16 %v67_v12, %v65_v11  ;;  %v69_v17 = vld [vmem:[#allocation6 + $0x40] sm:$0xff] }
  0x3d   :  { %336 = vmatpush1.bf16.msra.mxu0 %v335_v9  ;;  %v341_v16 = vpack.c.bf16 %v72_v14, %v70_v13  ;;  %v71_v18 = vld [vmem:[#allocation6 + $0x50] sm:$0xff]  ;;  %v74_v19 = vld [vmem:[#allocation6 + $0x68] sm:$0xff]  ;;  %v76_v20 = vld [vmem:[#allocation6 + $0x78] sm:$0xff]  ;;  %v89_v44 = vsub.s32 0, %v553_v43  ;;  %v93_v46 = vsub.s32 1, %v553_v43  ;;  %vm307_vm10 = vcmp.eq.s32.totalorder %v553_v43, 1 }
  0x3e   :  { %338 = vmatprep.subr.bf16.mxu0 %v337_v10  ;;  %v343_v21 = vpack.c.bf16 %v71_v18, %v69_v17  ;;  %v345_v22 = vpack.c.bf16 %v76_v20, %v74_v19  ;;  %v73_v23 = vld [vmem:[#allocation6 + $0x60] sm:$0xff]  ;;  %v75_v24 = vld [vmem:[#allocation6 + $0x70] sm:$0xff]  ;;  %v78_v25 = vld [vmem:[#allocation6 + $0x88] sm:$0xff]  ;;  %vm305_vm11 = vcmp.eq.s32.totalorder %v553_v43, 0 }
  0x3f   :  { %v80_v26 = vld [vmem:[#allocation6 + $0x98] sm:$0xff]  ;;  %v347_v27 = vpack.c.bf16 %v75_v24, %v73_v23  ;;  %v77_v29 = vld [vmem:[#allocation6 + $0x80] sm:$0xff]  ;;  %v79_v30 = vld [vmem:[#allocation6 + $0x90] sm:$0xff] }
  0x40   :  { %v349_v28 = vpack.c.bf16 %v80_v26, %v78_v25  ;;  %v82_v31 = vld [vmem:[#allocation6 + $0xa8] sm:$0xff]  ;;  %v84_v32 = vld [vmem:[#allocation6 + $0xb8] sm:$0x3]  ;;  %v351_v33 = vpack.c.bf16 %v79_v30, %v77_v29  ;;  %v81_v35 = vld [vmem:[#allocation6 + $0xa0] sm:$0xff] }
  0x41   :  { %340 = vmatpush1.bf16.msra.mxu0 %v339_v15  ;;  %v353_v34 = vpack.c.bf16 %v84_v32, %v82_v31  ;;  %v83_v36 = vld [vmem:[#allocation6 + $0xb0] sm:$0x3]  ;;  %vm354_vm2 = vmpackc.low %vm101_vm0, %vm481_vm1  ;;  %v60_v38 = vld [vmem:[#allocation3] sm:$0xff] }
  0x42   :  { %342 = vmatprep.subr.bf16.mxu0 %v341_v16  ;;  %v356_v37 = vpack.c.bf16 %v83_v36, %v81_v35  ;;  %v208_v39 = vld [vmem:[#allocation8 + $0x8] sm:$0xff]  ;;  %v332_v40 = vld [vmem:[#allocation2] ss:$0 sm:$0xff]  ;;  %v207_v13 = vld [vmem:[#allocation8] sm:$0xff] }
  0x43   :  { %283 = vmatprep.mubr.f32.mxu1 %v208_v39  ;;  %216 = vperm.xlu0 %368, %v332_v40   ;;  %v85_v45 = vld [vmem:[%s576_s2] sm:$0x3]  ;;  %s483_s2 = smov [#allocation9]  }
  0x44   :  { %v90_v47 = vrot.slane %v85_v45, %v89_v44  ;;  %v94_v48 = vrot.slane %v85_v45, %v93_v46  ;;  %s319_s30 = sshll.u32 %s483_s2, 4  ;;  %s320_s30 = int_to_ptr.vmem [resolvable:$true] %s319_s30 }
  0x45   :  { %344 = vmatpush1.bf16.msra.mxu0 %v343_v21  ;;  %s447_s6 = scalar_lea.vmem %s320_s30, 128  ;;  %p452_p11 = scmp.lt.s32.totalorder %s320_s30, %s320_s30 }
  0x46   :  { %346 = vmatprep.subr.bf16.mxu0 %v345_v22  ;;  %p448_p10 = scmp.ne.s32.totalorder %s320_s30, %s447_s6  ;;  %p453_p12 = scmp.lt.s32.totalorder %s447_s6, %s447_s6 }
  0x48   :  { %p454_p13 = por %p453_p12, %p452_p11 }
  0x49   :  { %348 = vmatpush1.bf16.msra.mxu0 %v347_v27 }
  0x4a   :  { %350 = vmatprep.subr.bf16.mxu0 %v349_v28  ;;  %p455_p0 = pnand %p454_p13, %p448_p10 }
  0x4d   :  { %352 = vmatpush1.bf16.msra.mxu0 %v351_v33 }
  0x4e   :  { %355 = vmatprep.subr.msk.bf16.mxu0 %vm354_vm2, %v353_v34 }
  0x51   :  { %358 = vmatpush1.bf16.msk.msra.mxu0 %vm354_vm2, %v356_v37 }
  0x54   :  { %331 = vmatmul.mubr.msk.f32.vlgmr.msra.gmra.mrb[0].mxu0 %vm97_vm3, %v60_v38 }
  0xc2   :  { %v217_v14 = vpop.permute.xlu0 %216 }
 0x127   :  { %v174_v49 = vpop.f32.mrb[0].mxu0 }
 0x128   :  { %v175_v50 = vadd.f32 %v174_v49, %v90_v47  ;;  %v176_v51 = vpop.f32.mrb[1].mxu0 }
 0x129   :  { %v177_v52 = vadd.f32 %v176_v51, %v94_v48 }
 0x12a   :  { %v181_v53 = vmin.f32 %v175_v50, 20.0  ;;  %vm179_vm7 = vcmp.gt.f32.partialorder %v175_v50, 20.0 }
 0x12b   :  { %v182_v54 = vmin.f32 %v177_v52, 20.0  ;;  %vm180_vm6 = vcmp.gt.f32.partialorder %v177_v52, 20.0 }
 0x12c   :  { %v183_v55 = vmul.f32 1.442695, %v181_v53 }
 0x12d   :  { %v185_v56 = vmul.f32 1.442695, %v182_v54 }
 0x12e   :  { %369 = vpow2.f32 %v183_v55 }
 0x12f   :  { %371 = vpow2.f32 %v185_v56 }
 0x138   :  { %v370_v57 = vpop.eup %369 }
 0x139   :  { %v372_v58 = vpop.eup %371  ;;  %v187_v59 = vadd.f32 1.0, %v370_v57  ;;  %v190_v61 = vmul.f32 -0.5, %v370_v57  ;;  %v193_v1 = vand.u32 2147483647, %v370_v57 }
 0x13a   :  { %v196_v60 = vadd.f32 1.0, %v372_v58  ;;  %v199_v62 = vmul.f32 -0.5, %v372_v58  ;;  %v202_v2 = vand.u32 2147483647, %v372_v58 }
 0x13b   :  { %373 = vlog2.f32 %v187_v59  ;;  %v191_v63 = vadd.f32 1.0, %v190_v61  ;;  %vm194_vm4 = vcmp.lt.f32.partialorder %v193_v1, 0.0004427343 }
 0x13c   :  { %375 = vlog2.f32 %v196_v60  ;;  %v200_v0 = vadd.f32 1.0, %v199_v62  ;;  %vm203_vm5 = vcmp.lt.f32.partialorder %v202_v2, 0.0004427343 }
 0x13d   :  { %v192_v6 = vmul.f32 %v370_v57, %v191_v63 }
 0x13e   :  { %v201_v8 = vmul.f32 %v372_v58, %v200_v0 }
 0x145   :  { %v374_v3 = vpop.eup %373 }
 0x146   :  { %v376_v4 = vpop.eup %375  ;;  %v189_v5 = vmul.f32 0.6931472, %v374_v3 }
 0x147   :  { %v198_v7 = vmul.f32 0.6931472, %v376_v4 }
 0x148   :  { %v195_v9 = vsel %vm194_vm4, %v192_v6, %v189_v5 }
 0x149   :  { %v204_v10 = vsel %vm203_vm5, %v201_v8, %v198_v7  ;;  %v205_v12 = vsel %vm179_vm7, %v175_v50, %v195_v9 }
 0x14a   :  { %v206_v11 = vsel %vm180_vm6, %v177_v52, %v204_v10 }
 0x14b   :  { %219 = vmatprep.subr.mxu1 %v206_v11 }
 0x14c   :  { %220 = vmatpush1.xpose.msra.mxu1 %v205_v12 }
 0x14f   :  { %284 = vmatmul.mubr.f32.vlgmr.msra.gmra.mrb[0].mxu1 %v207_v13 }
 0x222   :  { %v285_v15 = vpop.f32.mrb[0].mxu1 }
 0x223   :  { %v286_v16 = vadd.f32 %v285_v15, %v217_v14  ;;  %v287_v17 = vpop.f32.mrb[1].mxu1 }
 0x225   :  { %v290_v18 = vmin.f32 %v286_v16, 20.0  ;;  %vm289_vm9 = vcmp.gt.f32.partialorder %v286_v16, 20.0 }
 0x227   :  { %v291_v19 = vmul.f32 1.442695, %v290_v18 }
 0x229   :  { %377 = vpow2.f32 %v291_v19 }
 0x233   :  { %v378_v20 = vpop.eup %377 }
 0x234   :  { %v293_v21 = vadd.f32 1.0, %v378_v20  ;;  %v296_v22 = vmul.f32 -0.5, %v378_v20  ;;  %v299_v24 = vand.u32 2147483647, %v378_v20 }
 0x236   :  { %379 = vlog2.f32 %v293_v21  ;;  %v297_v23 = vadd.f32 1.0, %v296_v22  ;;  %vm300_vm8 = vcmp.lt.f32.partialorder %v299_v24, 0.0004427343 }
 0x238   :  { %v298_v27 = vmul.f32 %v378_v20, %v297_v23 }
 0x240   :  { %v380_v25 = vpop.eup %379 }
 0x241   :  { %v295_v26 = vmul.f32 0.6931472, %v380_v25 }
 0x243   :  { %v301_v28 = vsel %vm300_vm8, %v298_v27, %v295_v26 }
 0x244   :  { %v302_v29 = vsel %vm289_vm9, %v286_v16, %v301_v28 }
 0x245   :  { %v306_v30 = vsub.f32 0.0, %v302_v29  ;;  %v308_v31 = vsub.f32 %v286_v16, %v302_v29 }
 0x247   :  { %v309_v32 = vsel %vm307_vm10, %v308_v31, 0.0 }
 0x248   :  { %v310_v33 = vsel %vm305_vm11, %v306_v30, %v309_v32 }
 0x249   :  { %312 = vst.msk [vmem:[#allocation9] sm:$0xff] %vm311_vm12, %v310_v33 }
 0x24a   :  { %458 = shalt.err (!%p455_p0)
}
 0x24b   :  { %s459_s9 = scalar_lea.hbm %s579_s5, 128 }
 0x24c   :  { %p460_p1 = scmp.ne.s32.totalorder %s579_s5, %s459_s9  ;;  %p463_p2 = scmp.lt.u32.totalorder %s459_s9, %s579_s5 }
 0x24e   :  { %p465_p3 = pnand %p463_p2, %p460_p1 }
 0x250   :  { %468 = shalt.err (!%p465_p3)
}
 0x251   :  { %322 = dma.vmem_to_hbm [thread:$0]  %s320_s30, 128, %s579_s5, [#allocation5]  }
 0x252   :  { %473 = dma.done.wait [#allocation5], 128  }
 0x253   :  { %474 = vsyncadd [#allocation5], 4294967168 }
 0x254   :  { %326 = vsyncpa [#allocation4], 1 }
 0x255   :  { %327 = vsyncpa [#allocation7], 1 }
 0x256   :  { %328 = vsyncpa [#allocation5], 1 }

</bundles_post_ra>
